<compile_context>
chip_gen: v7x
topology: tpu7x:2x2x1
jax: 0.10.0
libtpu: 0.0.40
codegen_flags: <defaults>
</compile_context>

<pallas_src>
import functools

import jax
import jax.numpy as jnp
from jax.experimental import pallas as pl
from jax.experimental.pallas import tpu as pltpu

_PAD_VALUE = -1e30  # finite "−inf": exp underflows to 0, no NaN from (-inf)-(-inf)


def _nce_kernel(x_ref, row_ref, colm_ref, coll_ref, m_r, l_r):
    # x_ref   : (tm, tk) = x[i*tm:(i+1)*tm, k*tk:(k+1)*tk]   (single view of x)
    # row_ref : (1, tm)  per-row logsumexp(x[i, :]) for row block i (written at
    #           the last k step; block index constant in k -> resident output)
    # colm_ref: (1, tk)  per-tile column max        (one block per (i, k))
    # coll_ref: (1, tk)  per-tile column sum of exp (one block per (i, k))
    # m_r,l_r : (tm, 1)  online row logsumexp accumulators (VMEM scratch)
    k = pl.program_id(1)
    nk = pl.num_programs(1)
    tm, tk = x_ref.shape

    @pl.when(k == 0)
    def _init():
        m_r[...] = jnp.full_like(m_r, -jnp.inf)
        l_r[...] = jnp.zeros_like(l_r)

    xt = x_ref[...].astype(jnp.float32)  # bf16 inputs upcast after the DMA

    # ---- row direction: online logsumexp across the k (reduction) axis ----
    m_new = jnp.maximum(m_r[...], jnp.max(xt, axis=1, keepdims=True))  # (tm,1)
    p_r = jnp.exp(xt - m_new)                                          # (tm,tk)
    # Lane exp-sum on the MXU (vector-extended slot) instead of the XLU; all
    # 128 output lanes are identical, keep lane 0.  Neutral on HBM-bound
    # v5e/v6e, relieves the XLU on compute-bound v7x.
    row_sum = jnp.dot(p_r, jnp.ones((tk, 128), jnp.float32),
                      preferred_element_type=jnp.float32)[:, 0:1]      # (tm,1)
    l_r[...] = l_r[...] * jnp.exp(m_r[...] - m_new) + row_sum
    m_r[...] = m_new

    # ---- column direction: per-tile partial stats, combined in the wrapper --
    c_max = jnp.max(xt, axis=0, keepdims=True)                         # (1,tk)
    p_c = jnp.exp(xt - c_max)                                          # (tm,tk)
    # Sublane exp-sum via ones(1,tm) @ p_c on the MXU.
    col_sum = jnp.dot(jnp.ones((1, tm), jnp.float32), p_c,
                      preferred_element_type=jnp.float32)              # (1,tk)
    colm_ref[...] = c_max
    coll_ref[...] = col_sum

    @pl.when(k == nk - 1)
    def _finalize():
        # (tm,1) -> (1,tm): order-preserving layout bridge, once per row block.
        row_ref[...] = (m_r[...] + jnp.log(l_r[...])).reshape(1, tm)


def _pick_tm(bp, cap=512):
    """Largest multiple-of-128 divisor of bp <= cap, preferring an even
    row-block count >= 2 (v7x has 2 TensorCores on the 'parallel' axis)."""
    cand = [t for t in range(128, min(cap, bp) + 1, 128) if bp % t == 0]
    for t in reversed(cand):
        n = bp // t
        if n >= 2 and n % 2 == 0:
            return t
    for t in reversed(cand):
        if bp // t >= 2:
            return t
    return cand[-1]


def _pick_tk(bp, cap=2048):
    """Largest multiple-of-128 divisor of bp <= cap (big tk amortizes the
    ~0.35us per-grid-step overhead and the per-step accumulator rescale)."""
    t = (min(cap, bp) // 128) * 128
    while t > 128 and bp % t != 0:
        t -= 128
    return max(t, 128)


@functools.partial(jax.jit, static_argnames=("tm", "tk"))
def nce_loss(x, *, tm=None, tk=None):
    B, B2 = x.shape
    assert B == B2, "NCELoss expects a square similarity matrix"

    # Pad B up to a multiple of 128 so every block stays (8,128)-aligned and
    # stores stay unmasked; padded rows/cols use a large negative constant so
    # their exp contributions are exactly 0.
    Bp = ((B + 127) // 128) * 128
    if tm is None:
        tm = _pick_tm(Bp)
    if tk is None:
        tk = _pick_tk(Bp)
    assert Bp % tm == 0 and tm % 128 == 0, (Bp, tm)
    assert Bp % tk == 0 and tk % 128 == 0, (Bp, tk)

    xp = x if Bp == B else jnp.pad(
        x, ((0, Bp - B), (0, Bp - B)), constant_values=_PAD_VALUE)

    nI = Bp // tm
    nK = Bp // tk
    grid = (nI, nK)  # reduction (k) axis last

    # Double-buffered single-view footprint + margin, capped under v7x's
    # 32 MiB scoped VMEM (tm=512, tk=2048, f32 -> 8 MiB of tile buffers).
    itemsize = jnp.dtype(x.dtype).itemsize
    vmem_limit = int(max(16 << 20, min(2 * tm * tk * itemsize + (8 << 20),
                                       30 << 20)))

    row_lse, col_m, col_l = pl.pallas_call(
        _nce_kernel,
        out_shape=(
            jax.ShapeDtypeStruct((1, Bp), jnp.float32),        # row logsumexp
            jax.ShapeDtypeStruct((1, nI * Bp), jnp.float32),   # col partial max
            jax.ShapeDtypeStruct((1, nI * Bp), jnp.float32),   # col partial sum
        ),
        grid_spec=pltpu.PrefetchScalarGridSpec(
            num_scalar_prefetch=0,
            grid=grid,
            in_specs=[
                pl.BlockSpec((tm, tk), lambda i, k: (i, k)),   # single view
            ],
            out_specs=[
                pl.BlockSpec((1, tm), lambda i, k: (0, i)),
                pl.BlockSpec((1, tk), lambda i, k: (0, i * nK + k)),
                pl.BlockSpec((1, tk), lambda i, k: (0, i * nK + k)),
            ],
            scratch_shapes=[
                pltpu.VMEM((tm, 1), jnp.float32),  # m_r
                pltpu.VMEM((tm, 1), jnp.float32),  # l_r
            ],
        ),
        compiler_params=pltpu.CompilerParams(
            dimension_semantics=("parallel", "arbitrary"),
            vmem_limit_bytes=vmem_limit),
    )(xp)

    # O(B) combine in XLA (negligible next to the O(B^2) kernel stream).
    row_lse = row_lse[0, :B]                              # logsumexp(x[i, :])
    col_m = col_m.reshape(nI, Bp)[:, :B]                  # (nI, B) partials
    col_l = col_l.reshape(nI, Bp)[:, :B]
    m_all = jnp.max(col_m, axis=0)                        # (B,)
    l_all = jnp.sum(col_l * jnp.exp(col_m - m_all[None, :]), axis=0)
    col_lse = m_all + jnp.log(l_all)                      # logsumexp(x[:, i])
    lse = jnp.logaddexp(row_lse, col_lse)                 # logsumexp(logits[i])
    diag = jnp.diagonal(x).astype(jnp.float32)            # target logits
    return jnp.mean(lse - diag)


def nce_loss_ref(x):
    # pure-JAX reference (== torch.nn.CrossEntropyLoss with target=arange(B))
    logits = jnp.concatenate([x, x.T], axis=1)
    lse = jax.nn.logsumexp(logits.astype(jnp.float32), axis=1)
    diag = jnp.diagonal(x).astype(jnp.float32)
    return jnp.mean(lse - diag)


if __name__ == "__main__":
    key = jax.random.PRNGKey(0)
    k1, k2, k3 = jax.random.split(key, 3)

    # (1) Tiled path: B=256 with explicit 128x128 blocks -> grid (2, 2);
    #     exercises the online row accumulation, both MXU exp-sums and the
    #     wrapper-side column combine.  Tolerance covers MXU f32 multi-pass.
    x = jax.random.normal(k1, (256, 256), dtype=jnp.float32)
    loss = nce_loss(x, tm=128, tk=128)
    jax.block_until_ready(loss)
    expected = nce_loss_ref(x)
    assert jnp.allclose(loss, expected, atol=1e-3, rtol=1e-4), (loss, expected)

    # (2) bf16 input: BlockSpec DMAs bf16 (half the HBM traffic), kernel
    #     upcasts to f32 internally; default tile selection.
    xb = jax.random.normal(k2, (256, 256), dtype=jnp.float32).astype(jnp.bfloat16)
    loss_b = nce_loss(xb)
    jax.block_until_ready(loss_b)
    expected_b = nce_loss_ref(xb)
    assert jnp.allclose(loss_b, expected_b, atol=2e-3, rtol=1e-3), (
        loss_b, expected_b)

    # (3) Non-multiple-of-128 batch -> padded to 128 with the finite "-inf"
    #     constant; padded rows/cols excluded from diag and the mean.
    xs = jax.random.normal(k3, (100, 100), dtype=jnp.float32)
    loss_s = nce_loss(xs)
    jax.block_until_ready(loss_s)
    expected_s = nce_loss_ref(xs)
    assert jnp.allclose(loss_s, expected_s, atol=1e-3, rtol=1e-4), (
        loss_s, expected_s)

    print("KERNEL_OK")
</pallas_src>

<mosaic_0001>
module attributes {stable_mosaic.version = 11 : i64} {
  func.func @_nce_kernel(%arg0: i32, %arg1: i32, %arg2: memref<128x128xf32, #tpu.memory_space<vmem>>, %arg3: memref<1x128xf32, #tpu.memory_space<vmem>>, %arg4: memref<1x128xf32, #tpu.memory_space<vmem>>, %arg5: memref<1x128xf32, #tpu.memory_space<vmem>>, %arg6: memref<128x1xf32, #tpu.memory_space<vmem>>, %arg7: memref<128x1xf32, #tpu.memory_space<vmem>>) attributes {dimension_semantics = [#tpu.dimension_semantics<parallel>, #tpu.dimension_semantics<arbitrary>], iteration_bounds = array<i64: 2, 2>, scalar_prefetch = 0 : i64, scratch_operands = 2 : i64, tpu.core_type = #tpu.core_type<tc>, window_params = [{transform_indices = @transform_0, window_bounds = array<i64: 128, 128>}, {transform_indices = @transform_1, window_bounds = array<i64: 1, 128>}, {transform_indices = @transform_2, window_bounds = array<i64: 1, 128>}, {transform_indices = @transform_3, window_bounds = array<i64: 1, 128>}]} {
    %c0_i32 = arith.constant 0 : i32
    %0 = arith.cmpi eq, %arg1, %c0_i32 : i32
    %1 = arith.extui %0 : i1 to i32
    %c0_i32_0 = arith.constant 0 : i32
    %2 = arith.cmpi ne, %1, %c0_i32_0 : i32
    scf.if %2 {
      %cst_22 = arith.constant 0xFF800000 : f32
      %34 = vector.broadcast %cst_22 : f32 to vector<128x1xf32>
      %c0_23 = arith.constant 0 : index
      %c0_24 = arith.constant 0 : index
      %35 = vector.load %arg6[%c0_23, %c0_24] : memref<128x1xf32, #tpu.memory_space<vmem>>, vector<128x1xf32>
      tpu.vector_store %arg6[%c0_23, %c0_24], %34 {strides = array<i32>} : memref<128x1xf32, #tpu.memory_space<vmem>>, vector<128x1xf32>,
      %cst_25 = arith.constant 0.000000e+00 : f32
      %36 = vector.broadcast %cst_25 : f32 to vector<128x1xf32>
      %c0_26 = arith.constant 0 : index
      %c0_27 = arith.constant 0 : index
      %37 = vector.load %arg7[%c0_26, %c0_27] : memref<128x1xf32, #tpu.memory_space<vmem>>, vector<128x1xf32>
      tpu.vector_store %arg7[%c0_26, %c0_27], %36 {strides = array<i32>} : memref<128x1xf32, #tpu.memory_space<vmem>>, vector<128x1xf32>,
    } else {
    }
    %c0 = arith.constant 0 : index
    %c0_1 = arith.constant 0 : index
    %3 = vector.load %arg2[%c0, %c0_1] : memref<128x128xf32, #tpu.memory_space<vmem>>, vector<128x128xf32>
    %c0_2 = arith.constant 0 : index
    %c0_3 = arith.constant 0 : index
    %4 = vector.load %arg6[%c0_2, %c0_3] : memref<128x1xf32, #tpu.memory_space<vmem>>, vector<128x1xf32>
    %cst = arith.constant dense<0xFF800000> : vector<128xf32>
    %5 = vector.multi_reduction <maximumf>, %3, %cst [1] : vector<128x128xf32> to vector<128xf32>
    %6 = vector.shape_cast %5 : vector<128xf32> to vector<128x1xf32>
    %7 = arith.maximumf %4, %6 : vector<128x1xf32>
    %8 = vector.broadcast %7 : vector<128x1xf32> to vector<128x128xf32>
    %9 = arith.subf %3, %8 : vector<128x128xf32>
    %10 = math.exp %9 : vector<128x128xf32>
    %cst_4 = arith.constant 1.000000e+00 : f32
    %11 = vector.broadcast %cst_4 : f32 to vector<128x128xf32>
    %cst_5 = arith.constant dense<0.000000e+00> : vector<128x128xf32>
    %12 = tpu.matmul %10, %11, %cst_5 {dimension_numbers = #tpu.dot_dimension_numbers<[1], [0], [0], [1], [0, 0, 1, 1], [], []>} : vector<128x128xf32>, vector<128x128xf32>, vector<128x128xf32> -> vector<128x128xf32>
    %13 = vector.extract_strided_slice %12 {offsets = [0, 0], sizes = [128, 1], strides = [1, 1]} : vector<128x128xf32> to vector<128x1xf32>
    %c0_6 = arith.constant 0 : index
    %c0_7 = arith.constant 0 : index
    %14 = vector.load %arg7[%c0_6, %c0_7] : memref<128x1xf32, #tpu.memory_space<vmem>>, vector<128x1xf32>
    %c0_8 = arith.constant 0 : index
    %c0_9 = arith.constant 0 : index
    %15 = vector.load %arg6[%c0_8, %c0_9] : memref<128x1xf32, #tpu.memory_space<vmem>>, vector<128x1xf32>
    %16 = arith.subf %15, %7 : vector<128x1xf32>
    %17 = math.exp %16 : vector<128x1xf32>
    %18 = arith.mulf %14, %17 : vector<128x1xf32>
    %19 = arith.addf %18, %13 : vector<128x1xf32>
    %c0_10 = arith.constant 0 : index
    %c0_11 = arith.constant 0 : index
    %20 = vector.load %arg7[%c0_10, %c0_11] : memref<128x1xf32, #tpu.memory_space<vmem>>, vector<128x1xf32>
    tpu.vector_store %arg7[%c0_10, %c0_11], %19 {strides = array<i32>} : memref<128x1xf32, #tpu.memory_space<vmem>>, vector<128x1xf32>,
    %c0_12 = arith.constant 0 : index
    %c0_13 = arith.constant 0 : index
    %21 = vector.load %arg6[%c0_12, %c0_13] : memref<128x1xf32, #tpu.memory_space<vmem>>, vector<128x1xf32>
    tpu.vector_store %arg6[%c0_12, %c0_13], %7 {strides = array<i32>} : memref<128x1xf32, #tpu.memory_space<vmem>>, vector<128x1xf32>,
    %cst_14 = arith.constant dense<0xFF800000> : vector<128xf32>
    %22 = vector.multi_reduction <maximumf>, %3, %cst_14 [0] : vector<128x128xf32> to vector<128xf32>
    %23 = vector.shape_cast %22 : vector<128xf32> to vector<1x128xf32>
    %24 = vector.broadcast %23 : vector<1x128xf32> to vector<128x128xf32>
    %25 = arith.subf %3, %24 : vector<128x128xf32>
    %26 = math.exp %25 : vector<128x128xf32>
    %cst_15 = arith.constant 1.000000e+00 : f32
    %27 = vector.broadcast %cst_15 : f32 to vector<1x128xf32>
    %cst_16 = arith.constant dense<0.000000e+00> : vector<1x128xf32>
    %28 = tpu.matmul %27, %26, %cst_16 {dimension_numbers = #tpu.dot_dimension_numbers<[1], [0], [0], [1], [0, 0, 1, 1], [], []>} : vector<1x128xf32>, vector<128x128xf32>, vector<1x128xf32> -> vector<1x128xf32>
    %c0_17 = arith.constant 0 : index
    %c0_18 = arith.constant 0 : index
    %29 = vector.load %arg4[%c0_17, %c0_18] : memref<1x128xf32, #tpu.memory_space<vmem>>, vector<1x128xf32>
    tpu.vector_store %arg4[%c0_17, %c0_18], %23 {strides = array<i32>} : memref<1x128xf32, #tpu.memory_space<vmem>>, vector<1x128xf32>,
    %c0_19 = arith.constant 0 : index
    %c0_20 = arith.constant 0 : index
    %30 = vector.load %arg5[%c0_19, %c0_20] : memref<1x128xf32, #tpu.memory_space<vmem>>, vector<1x128xf32>
    tpu.vector_store %arg5[%c0_19, %c0_20], %28 {strides = array<i32>} : memref<1x128xf32, #tpu.memory_space<vmem>>, vector<1x128xf32>,
    %c1_i32 = arith.constant 1 : i32
    %31 = arith.cmpi eq, %arg1, %c1_i32 : i32
    %32 = arith.extui %31 : i1 to i32
    %c0_i32_21 = arith.constant 0 : i32
    %33 = arith.cmpi ne, %32, %c0_i32_21 : i32
    scf.if %33 {
      %c0_22 = arith.constant 0 : index
      %c0_23 = arith.constant 0 : index
      %34 = vector.load %arg6[%c0_22, %c0_23] : memref<128x1xf32, #tpu.memory_space<vmem>>, vector<128x1xf32>
      %c0_24 = arith.constant 0 : index
      %c0_25 = arith.constant 0 : index
      %35 = vector.load %arg7[%c0_24, %c0_25] : memref<128x1xf32, #tpu.memory_space<vmem>>, vector<128x1xf32>
      %36 = math.log %35 : vector<128x1xf32>
      %37 = arith.addf %34, %36 : vector<128x1xf32>
      %38 = vector.shape_cast %37 : vector<128x1xf32> to vector<1x128xf32>
      %c0_26 = arith.constant 0 : index
      %c0_27 = arith.constant 0 : index
      %39 = vector.load %arg3[%c0_26, %c0_27] : memref<1x128xf32, #tpu.memory_space<vmem>>, vector<1x128xf32>
      tpu.vector_store %arg3[%c0_26, %c0_27], %38 {strides = array<i32>} : memref<1x128xf32, #tpu.memory_space<vmem>>, vector<1x128xf32>,
    } else {
    }
    return
  }
  func.func @transform_0(%arg0: i32, %arg1: i32) -> (i32, i32) {
    %c0_i32 = arith.constant 0 : i32
    return %arg0, %arg1 : i32, i32
  }
  func.func @transform_1(%arg0: i32, %arg1: i32) -> (i32, i32) {
    %c0_i32 = arith.constant 0 : i32
    %c0_i32_0 = arith.constant 0 : i32
    return %c0_i32, %arg0 : i32, i32
  }
  func.func @transform_2(%arg0: i32, %arg1: i32) -> (i32, i32) {
    %c2_i32 = arith.constant 2 : i32
    %0 = arith.muli %arg0, %c2_i32 : i32
    %1 = arith.addi %0, %arg1 : i32
    %c0_i32 = arith.constant 0 : i32
    %c0_i32_0 = arith.constant 0 : i32
    return %c0_i32, %1 : i32, i32
  }
  func.func @transform_3(%arg0: i32, %arg1: i32) -> (i32, i32) {
    %c2_i32 = arith.constant 2 : i32
    %0 = arith.muli %arg0, %c2_i32 : i32
    %1 = arith.addi %0, %arg1 : i32
    %c0_i32 = arith.constant 0 : i32
    %c0_i32_0 = arith.constant 0 : i32
    return %c0_i32, %1 : i32, i32
  }
}

</mosaic_0001>

<bundles_post_ra>
// kernel: nce_loss.1
= control target key start
LH: loop header
LB: loop body
LE: loop exit
PB: predicated region body
PF: predicated region fallthrough
CT: control target
= control target key end

     0   :  { %s1849_s12 = smov 0   ;;  %s1851_s13 = smov 0   ;;  %s2421_s0 = inlined_call_operand.vmem [shape: f32[256,256], index: 0, kind: input, shape index: {}]   ;;  %s2422_s1 = inlined_call_operand.vmem [shape: f32[1,256], index: 1, kind: output, shape index: {0}]   ;;  %s2423_s2 = inlined_call_operand.vmem [shape: f32[1,512], index: 2, kind: output, shape index: {1}]   ;;  %s2424_s3 = inlined_call_operand.vmem [shape: f32[1,512], index: 3, kind: output, shape index: {2}]  }
   0x1   :  { %s1853_s14 = smov 0   ;;  %s1855_s15 = smov 0  }
   0x2   :  { %s1857_s16 = smov 0   ;;  %s1859_s17 = smov 0  }
   0x3   :  { %s1861_s18 = smov 0  }
   0x4 LB: > { %s23_s19 = sadd.s32 1, %s1810_s16  ;;  %s26_s20 = sadd.s32 1, %s1814_s17  ;;  %s1818_s18 = sphi %s1861_s18, %s14_s18   ;;  %s1814_s17 = sphi %s1859_s17, %s2455_s17   ;;  %s1810_s16 = sphi %s1857_s16, %s2454_s16   ;;  %s1806_s15 = sphi %s1855_s15, %s2453_s15   ;;  %s1802_s14 = sphi %s1853_s14, %s2452_s14   ;;  %s1798_s13 = sphi %s1851_s13, %s2451_s13   ;;  %s1794_s12 = sphi %s1849_s12, %s2450_s12  }
   0x5   : > { %p24_p0 = scmp.ge.s32.totalorder %s23_s19, 2  ;;  %p42_p1 = scmp.ne.s32.totalorder %s1798_s13, %s1794_s12 }
   0x6   : > { %p43_p2 = scmp.eq.s32.totalorder %s1818_s18, 0  ;;  %s35_s24 = sadd.s32 1, %s1798_s13 }
   0x7   : > { %s2457_s19 = smov (%p24_p0, %s23_s19), 0  ;;  %s2459_s20 = smov (!%p24_p0, %s26_s20), %s1814_s17 }
   0x8   : > { %p44_p3 = por %p43_p2, %p42_p1  ;;  %p28_p4 = scmp.ge.s32.totalorder %s2459_s20, 2 }
   0x9   : > { %s31_s21 = ssub.s32 %s1810_s16, %s2457_s19  ;;  %p1373_p6 = scmp.ge.s32.totalorder %s1818_s18, 4 }
   0xa   : > { %s2461_s20 = smov (%p28_p4, %s2459_s20), 0 }
   0xb   : > { %s30_s22 = ssub.s32 %s1814_s17, %s2461_s20  ;;  %154 = sbr.rel (%p1373_p6) target bundleno = 32 (0x20), region = 16 }
   0xc   : > { %s32_s23 = sor.u32 %s31_s21, %s30_s22 }
   0xd   : > { %p33_p5 = scmp.eq.s32.totalorder %s32_s23, 0 }
   0xf   : > { %s1900_s25 = scalar_select %p33_p5, %s1798_s13, %s35_s24  }
  0x12   : > { %157 = sbr.rel (!%p44_p3) target bundleno = 32 (0x20), region = 20  ;;  %s159_s26 = sand.u32 (%p44_p3), 1, %s1798_s13  }
  0x13   : > { %s1386_s27 = sshll.u32 (%p44_p3), %s1814_s17, 5  ;;  %s1374_s28 = sshll.u32 (%p44_p3), %s159_s26, 7 }
  0x14   : > { %s164_s29 = sadd.s32 (%p44_p3), %s1810_s16, %s1386_s27  ;;  %s161_s7 = scalar_lea.vmem (%p44_p3), [#allocation4], %s1374_s28 }
  0x15   : > { %s1377_s30 = sshll.u32 (%p44_p3), %s164_s29, 3 }
  0x16   : > { %s1909_s6 = scalar_lea.vmem (%p44_p3), %s2421_s0, %s1377_s30 }
  0x17   : > { %v224_v0 = vld [vmem:[%s1909_s6] sm:$0xff] (%p44_p3)  ;;  %v226_v1 = vld [vmem:[%s1909_s6 + $0x10] sm:$0xff] (%p44_p3) }
  0x18   : > { %v228_v2 = vld [vmem:[%s1909_s6 + $0x20] sm:$0xff] (%p44_p3)  ;;  %225 = vst [vmem:[%s161_s7] sm:$0xff] (%p44_p3), %v224_v0  ;;  %227 = vst [vmem:[%s161_s7 + $0x8] sm:$0xff] (%p44_p3), %v226_v1  ;;  %v230_v3 = vld [vmem:[%s1909_s6 + $0x30] sm:$0xff] (%p44_p3) }
  0x19   : > { %229 = vst [vmem:[%s161_s7 + $0x10] sm:$0xff] %v228_v2  ;;  %v232_v4 = vld [vmem:[%s1909_s6 + $0x40] sm:$0xff]  ;;  %v234_v5 = vld [vmem:[%s1909_s6 + $0x50] sm:$0xff]  ;;  %231 = vst [vmem:[%s161_s7 + $0x18] sm:$0xff] %v230_v3 }
  0x1a   : > { %233 = vst [vmem:[%s161_s7 + $0x20] sm:$0xff] %v232_v4  ;;  %235 = vst [vmem:[%s161_s7 + $0x28] sm:$0xff] %v234_v5  ;;  %v236_v6 = vld [vmem:[%s1909_s6 + $0x60] sm:$0xff]  ;;  %v238_v7 = vld [vmem:[%s1909_s6 + $0x70] sm:$0xff] }
  0x1b   : > { %v240_v8 = vld [vmem:[%s1909_s6 + $0x80] sm:$0xff]  ;;  %237 = vst [vmem:[%s161_s7 + $0x30] sm:$0xff] %v236_v6  ;;  %239 = vst [vmem:[%s161_s7 + $0x38] sm:$0xff] %v238_v7  ;;  %v242_v9 = vld [vmem:[%s1909_s6 + $0x90] sm:$0xff] }
  0x1c   : > { %241 = vst [vmem:[%s161_s7 + $0x40] sm:$0xff] %v240_v8  ;;  %v244_v10 = vld [vmem:[%s1909_s6 + $0xa0] sm:$0xff]  ;;  %v246_v11 = vld [vmem:[%s1909_s6 + $0xb0] sm:$0xff]  ;;  %243 = vst [vmem:[%s161_s7 + $0x48] sm:$0xff] %v242_v9 }
  0x1d   : > { %245 = vst [vmem:[%s161_s7 + $0x50] sm:$0xff] %v244_v10  ;;  %247 = vst [vmem:[%s161_s7 + $0x58] sm:$0xff] %v246_v11  ;;  %v248_v12 = vld [vmem:[%s1909_s6 + $0xc0] sm:$0xff]  ;;  %v250_v13 = vld [vmem:[%s1909_s6 + $0xd0] sm:$0xff] }
  0x1e   : > { %v252_v14 = vld [vmem:[%s1909_s6 + $0xe0] sm:$0xff]  ;;  %249 = vst [vmem:[%s161_s7 + $0x60] sm:$0xff] %v248_v12  ;;  %251 = vst [vmem:[%s161_s7 + $0x68] sm:$0xff] %v250_v13  ;;  %v254_v15 = vld [vmem:[%s1909_s6 + $0xf0] sm:$0xff] }
  0x1f   : > { %253 = vst [vmem:[%s161_s7 + $0x70] sm:$0xff] %v252_v14  ;;  %255 = vst [vmem:[%s161_s7 + $0x78] sm:$0xff] %v254_v15 }
  0x20 PF: > { %p1378_p7 = scmp.ge.s32.totalorder %s1818_s18, 1  ;;  %p260_p8 = scmp.lt.s32.totalorder %s1818_s18, 5 }
  0x22   : > { %p261_p9 = pnand %p1378_p7, %p260_p8 }
  0x24   : > { %264 = sbr.rel (%p261_p9) target bundleno = 769 (0x301), region = 58 }
  0x2b   : > { %s267_s8 = sand.u32 1, %s1794_s12   ;;  %p299_p10 = scmp.lt.s32.totalorder %s1806_s15, 1 }
  0x2c   : > { %s1379_s9 = sshll.u32 %s267_s8, 7  ;;  %s1380_s10 = sshll.u32 %s1806_s15, 1 }
  0x2d   : > { %s303_s11 = sadd.s32 %s1802_s14, %s1380_s10  ;;  %s2463_s15 = smov (!%p299_p10, %s1806_s15), 1 }
  0x2e   : > { %p304_p11 = scmp.lt.s32.totalorder %s303_s11, 3  ;;  %s301_s23 = scalar_lea.vmem %s2422_s1, %s2463_s15 }
  0x2f   : > { %s1950_s30 = scalar_lea.vmem [#allocation4], %s1379_s9  ;;  %p1382_p12 = scmp.ne.s32.totalorder %s1802_s14, 0 }
  0x30   : > { %s2465_s11 = smov (!%p304_p11, %s303_s11), 3  ;;  %vm320_vm0 = vcmask (!%p1382_p12), 7168   ;;  %v1820_v16 = vmov (!%p1382_p12), -inf   ;;  %v1821_v17 = vmov (!%p1382_p12), 0.0  }
  0x31   : > { %s306_s12 = scalar_lea.vmem %s2423_s2, %s2465_s11  ;;  %s313_s29 = scalar_lea.vmem %s2424_s3, %s2465_s11  ;;  %321 = vst.msk [vmem:[#allocation2] sm:$0xff] (!%p1382_p12), %vm320_vm0, %v1820_v16  ;;  %322 = vst.msk [vmem:[#allocation2 + $0x8] sm:$0xff] (!%p1382_p12), %vm320_vm0, %v1820_v16 }
  0x32   : > { %319 = sbr.rel (%p1382_p12) target bundleno = 65 (0x41), region = 66  ;;  %323 = vst.msk [vmem:[#allocation2 + $0x10] sm:$0xff] (!%p1382_p12), %vm320_vm0, %v1820_v16  ;;  %324 = vst.msk [vmem:[#allocation2 + $0x18] sm:$0xff] (!%p1382_p12), %vm320_vm0, %v1820_v16 }
  0x33   : > { %325 = vst.msk [vmem:[#allocation2 + $0x20] sm:$0xff] (!%p1382_p12), %vm320_vm0, %v1820_v16  ;;  %326 = vst.msk [vmem:[#allocation2 + $0x28] sm:$0xff] (!%p1382_p12), %vm320_vm0, %v1820_v16 }
  0x34   : > { %327 = vst.msk [vmem:[#allocation2 + $0x30] sm:$0xff] (!%p1382_p12), %vm320_vm0, %v1820_v16  ;;  %328 = vst.msk [vmem:[#allocation2 + $0x38] sm:$0xff] (!%p1382_p12), %vm320_vm0, %v1820_v16 }
  0x35   : > { %329 = vst.msk [vmem:[#allocation2 + $0x40] sm:$0xff] (!%p1382_p12), %vm320_vm0, %v1820_v16  ;;  %330 = vst.msk [vmem:[#allocation2 + $0x48] sm:$0xff] (!%p1382_p12), %vm320_vm0, %v1820_v16 }
  0x36   : > { %331 = vst.msk [vmem:[#allocation2 + $0x50] sm:$0xff] (!%p1382_p12), %vm320_vm0, %v1820_v16  ;;  %332 = vst.msk [vmem:[#allocation2 + $0x58] sm:$0xff] (!%p1382_p12), %vm320_vm0, %v1820_v16 }
  0x37   : > { %333 = vst.msk [vmem:[#allocation2 + $0x60] sm:$0xff] (!%p1382_p12), %vm320_vm0, %v1820_v16  ;;  %334 = vst.msk [vmem:[#allocation2 + $0x68] sm:$0xff] (!%p1382_p12), %vm320_vm0, %v1820_v16 }
  0x38   : > { %335 = vst.msk [vmem:[#allocation2 + $0x70] sm:$0xff] (!%p1382_p12), %vm320_vm0, %v1820_v16  ;;  %336 = vst.msk [vmem:[#allocation2 + $0x78] sm:$0xff] (!%p1382_p12), %vm320_vm0, %v1820_v16 }
  0x39   : > { %337 = vst.msk [vmem:[#allocation3] sm:$0xff] %vm320_vm0, %v1821_v17  ;;  %338 = vst.msk [vmem:[#allocation3 + $0x8] sm:$0xff] %vm320_vm0, %v1821_v17 }
  0x3a   : > { %339 = vst.msk [vmem:[#allocation3 + $0x10] sm:$0xff] %vm320_vm0, %v1821_v17  ;;  %340 = vst.msk [vmem:[#allocation3 + $0x18] sm:$0xff] %vm320_vm0, %v1821_v17 }
  0x3b   : > { %341 = vst.msk [vmem:[#allocation3 + $0x20] sm:$0xff] %vm320_vm0, %v1821_v17  ;;  %342 = vst.msk [vmem:[#allocation3 + $0x28] sm:$0xff] %vm320_vm0, %v1821_v17 }
  0x3c   : > { %343 = vst.msk [vmem:[#allocation3 + $0x30] sm:$0xff] %vm320_vm0, %v1821_v17  ;;  %344 = vst.msk [vmem:[#allocation3 + $0x38] sm:$0xff] %vm320_vm0, %v1821_v17 }
  0x3d   : > { %345 = vst.msk [vmem:[#allocation3 + $0x40] sm:$0xff] %vm320_vm0, %v1821_v17  ;;  %346 = vst.msk [vmem:[#allocation3 + $0x48] sm:$0xff] %vm320_vm0, %v1821_v17 }
  0x3e   : > { %347 = vst.msk [vmem:[#allocation3 + $0x50] sm:$0xff] %vm320_vm0, %v1821_v17  ;;  %348 = vst.msk [vmem:[#allocation3 + $0x58] sm:$0xff] %vm320_vm0, %v1821_v17 }
  0x3f   : > { %349 = vst.msk [vmem:[#allocation3 + $0x60] sm:$0xff] %vm320_vm0, %v1821_v17  ;;  %350 = vst.msk [vmem:[#allocation3 + $0x68] sm:$0xff] %vm320_vm0, %v1821_v17 }
  0x40   : > { %351 = vst.msk [vmem:[#allocation3 + $0x70] sm:$0xff] %vm320_vm0, %v1821_v17  ;;  %352 = vst.msk [vmem:[#allocation3 + $0x78] sm:$0xff] %vm320_vm0, %v1821_v17 }
  0x41 PF: > { %v1986_v18 = vld [vmem:[%s1950_s30 + $0x10] sm:$0xff]  ;;  %v1989_v19 = vld [vmem:[%s1950_s30] sm:$0xff]  ;;  %v1992_v20 = vld [vmem:[%s1950_s30 + $0x18] sm:$0xff]  ;;  %v1822_v52 = vmov 0   ;;  %v1823_v56 = vmov 1.0|1.0  }
  0x42   : > { %389 = vmax.xlane.f32.xlu1 %v1986_v18  ;;  %385 = vmax.xlane.f32.xlu0 %v1989_v19  ;;  %v1997_v21 = vld [vmem:[%s1950_s30 + $0x8] sm:$0xff]  ;;  %v2003_v23 = vld [vmem:[%s1950_s30 + $0x38] sm:$0xff]  ;;  %v2010_v26 = vld [vmem:[%s1950_s30 + $0x20] sm:$0xff]  ;;  %vm802_vm1 = vcmask 7168   ;;  %vm1825_vm2 = vmmov 0   ;;  %p1383_p13 = scmp.ne.s32.totalorder %s1802_s14, 1 }
  0x43   : > { %v2000_v22 = vld [vmem:[%s1950_s30 + $0x28] sm:$0xff]  ;;  %v838_v25 = vmax.f32 %v1992_v20, %v2003_v23  ;;  %v835_v28 = vmax.f32 %v1989_v19, %v2010_v26  ;;  %v2018_v29 = vld [vmem:[%s1950_s30 + $0x58] sm:$0xff]  ;;  %v2021_v30 = vld [vmem:[%s1950_s30 + $0x30] sm:$0xff]  ;;  %1632 = vset.pattern.permute.xlu0 %v1822_v52  ;;  %1633 = vset.pattern.permute.xlu1 %v1822_v52  ;;  %vm1135_vm3 = vcmask (!%p1383_p13), 130112   ;;  %vm1142_vm4 = vcmask (!%p1383_p13), 195712  }
  0x44   : > { %v836_v24 = vmax.f32 %v1997_v21, %v2000_v22  ;;  %v2013_v27 = vld [vmem:[%s1950_s30 + $0x48] sm:$0xff]  ;;  %v837_v33 = vmax.f32 %v1986_v18, %v2021_v30  ;;  %v2028_v34 = vld [vmem:[%s1950_s30 + $0x40] sm:$0xff]  ;;  %v2036_v36 = vld [vmem:[%s1950_s30 + $0x78] sm:$0xff]  ;;  %1527 = vmatprep.subr.bf16.mxu0 %v1823_v56  ;;  %vm1149_vm5 = vcmask (!%p1383_p13), 261312   ;;  %vm1156_vm6 = vcmask (!%p1383_p13), 326912  }
  0x45   : > { %v842_v32 = vmax.f32 %v838_v25, %v2018_v29  ;;  %v2033_v35 = vld [vmem:[%s1950_s30 + $0x68] sm:$0xff]  ;;  %v839_v37 = vmax.f32 %v835_v28, %v2028_v34  ;;  %v2040_v38 = vld [vmem:[%s1950_s30 + $0x50] sm:$0xff]  ;;  %v2046_v42 = vld [vmem:[%s1950_s30 + $0x60] sm:$0xff]  ;;  %1528 = vmatpush3.bf16.msra.mxu0 %v1823_v56  ;;  %vm1163_vm7 = vcmask (!%p1383_p13), 392512   ;;  %vm1170_vm8 = vcmask (!%p1383_p13), 458112  }
  0x46   : > { %v840_v31 = vmax.f32 %v836_v24, %v2013_v27  ;;  %391 = vmax.xlane.f32.xlu1 %v1992_v20  ;;  %387 = vmax.xlane.f32.xlu0 %v1997_v21  ;;  %v841_v41 = vmax.f32 %v837_v33, %v2040_v38  ;;  %v2050_v44 = vld [vmem:[%s1950_s30 + $0x70] sm:$0xff]  ;;  %v2075_v58 = vld [vmem:[#allocation2] sm:$0xff]  ;;  %v2083_v63 = vld [vmem:[#allocation2 + $0x18] sm:$0xff]  ;;  %vm1177_vm9 = vcmask (!%p1383_p13), 523712   ;;  %vm1184_vm10 = vcmask (!%p1383_p13), 589312  }
  0x47   : > { %v846_v40 = vmax.f32 %v842_v32, %v2036_v36  ;;  %v843_v43 = vmax.f32 %v839_v37, %v2046_v42  ;;  %1529 = vmatprep.subr.bf16.mxu0 %v1823_v56  ;;  %v2073_v57 = vld [vmem:[#allocation2 + $0x10] sm:$0xff]  ;;  %v2085_v0 = vld [vmem:[#allocation2 + $0x8] sm:$0xff]  ;;  %v2104_v8 = vld [vmem:[#allocation2 + $0x20] sm:$0xff]  ;;  %vm1191_vm11 = vcmask (!%p1383_p13), 654912   ;;  %vm1198_vm12 = vcmask (!%p1383_p13), 720512  }
  0x48   : > { %v844_v39 = vmax.f32 %v840_v31, %v2033_v35  ;;  %v845_v45 = vmax.f32 %v841_v41, %v2050_v44  ;;  %v2102_v7 = vld [vmem:[#allocation2 + $0x28] sm:$0xff]  ;;  %v2121_v15 = vld [vmem:[#allocation2 + $0x38] sm:$0xff]  ;;  %v2123_v16 = vld [vmem:[#allocation2 + $0x30] sm:$0xff]  ;;  %vm1205_vm13 = vcmask (!%p1383_p13), 786112   ;;  %vm1212_vm14 = vcmask (!%p1383_p13), 851712  }
  0x49   : > { %1530 = vmatpush3.bf16.msra.mxu0 %v1823_v56  ;;  %v2140_v33 = vld [vmem:[#allocation2 + $0x48] sm:$0xff]  ;;  %v2142_v37 = vld [vmem:[#allocation2 + $0x40] sm:$0xff]  ;;  %vm1219_vm15 = vcmask (!%p1383_p13), 917312   ;;  %vm1226_vm0 = vcmask (!%p1383_p13), 982912  }
  0x4a   : > { %395 = vmax.xlane.f32.xlu1 %v2000_v22  ;;  %393 = vmax.xlane.f32.xlu0 %v2010_v26  ;;  %v847_v46 = vmax.f32 %v843_v43, %v844_v39  ;;  %v848_v47 = vmax.f32 %v845_v45, %v846_v40 }
  0x4b   : > { %1531 = vmatprep.subr.bf16.mxu0 %v1823_v56 }
  0x4c   : > { %v849_v48 = vmax.f32 %v847_v46, %v848_v47  ;;  %v2159_v47 = vld [vmem:[#allocation2 + $0x58] sm:$0xff] }
  0x4d   : > { %1532 = vmatpush3.bf16.msra.mxu0 %v1823_v56 }
  0x4e   : > { %399 = vmax.xlane.f32.xlu1 %v2003_v23  ;;  %397 = vmax.xlane.f32.xlu0 %v2021_v30  ;;  %v850_v49 = vrot.slane %v849_v48, 4 }
  0x4f   : > { %1533 = vmatprep.subr.bf16.mxu0 %v1823_v56 }
  0x50   : > { %v851_v50 = vmax.f32 %v849_v48, %v850_v49  ;;  %v2161_v48 = vld [vmem:[#allocation2 + $0x50] sm:$0xff] }
  0x51   : > { %1534 = vmatpush3.bf16.msra.mxu0 %v1823_v56 }
  0x52   : > { %403 = vmax.xlane.f32.xlu1 %v2013_v27  ;;  %401 = vmax.xlane.f32.xlu0 %v2028_v34  ;;  %v852_v51 = vrot.slane %v851_v50, 2 }
  0x53   : > { %1535 = vmatprep.subr.bf16.mxu0 %v1823_v56 }
  0x54   : > { %v853_v53 = vmax.f32 %v851_v50, %v852_v51 }
  0x55   : > { %1536 = vmatpush3.bf16.msra.mxu0 %v1823_v56 }
  0x56   : > { %407 = vmax.xlane.f32.xlu1 %v2018_v29  ;;  %405 = vmax.xlane.f32.xlu0 %v2040_v38  ;;  %v854_v54 = vrot.slane %v853_v53, 1 }
  0x57   : > { %1537 = vmatprep.subr.bf16.mxu0 %v1823_v56 }
  0x58   : > { %v2061_v55 = vmax.f32 %v853_v53, %v854_v54 }
  0x59   : > { %1538 = vmatpush3.bf16.msra.mxu0 %v1823_v56 }
  0x5a   : > { %411 = vmax.xlane.f32.xlu1 %v2033_v35  ;;  %409 = vmax.xlane.f32.xlu0 %v2046_v42  ;;  %974 = vst [vmem:[%s306_s12] sm:$0x1] %v2061_v55  ;;  %v856_v49 = vsub.f32 %v1989_v19, %v2061_v55  ;;  %v857_v50 = vsub.f32 %v1997_v21, %v2061_v55 }
  0x5b   : > { %1539 = vmatprep.subr.bf16.mxu0 %v1823_v56  ;;  %v861_v39 = vsub.f32 %v2000_v22, %v2061_v55  ;;  %v864_v1 = vsub.f32 %v2028_v34, %v2061_v55 }
  0x5d   : > { %1540 = vmatpush3.bf16.msra.mxu0 %v1823_v56  ;;  %v888_v2 = vmul.f32 1.442695, %v864_v1 }
  0x5e   : > { %415 = vmax.xlane.f32.xlu1 %v2036_v36  ;;  %413 = vmax.xlane.f32.xlu0 %v2050_v44 }
  0x5f   : > { %1541 = vmatprep.subr.bf16.mxu0 %v1823_v56 }
  0x61   : > { %1542 = vmatpush3.bf16.msra.mxu0 %v1823_v56  ;;  %v872_v56 = vmul.f32 1.442695, %v856_v49 }
  0x63   : > { %1634 = vpow2.f32 %v872_v56 }
  0xcf   : > { %v390_v59 = vpop.xlane.xlu1 %389  ;;  %v386_v60 = vpop.xlane.xlu0 %385 }
  0xd0   : > { %v2078_v61 = vmax.f32 %v2073_v57, %v390_v59  ;;  %v2081_v62 = vmax.f32 %v2075_v58, %v386_v60 }
  0xd2   : > { %821 = vst.msk [vmem:[#allocation2 + $0x10] sm:$0xff] %vm802_vm1, %v2078_v61  ;;  %819 = vst.msk [vmem:[#allocation2] sm:$0xff] %vm802_vm1, %v2081_v62  ;;  %435 = vperm.xlu0 %1632, %v2081_v62  }
  0xd3   : > { %v392_v3 = vpop.xlane.xlu1 %391  ;;  %v388_v4 = vpop.xlane.xlu0 %387 }
  0xd4   : > { %v2097_v5 = vmax.f32 %v2083_v63, %v392_v3  ;;  %v2100_v6 = vmax.f32 %v2085_v0, %v388_v4  ;;  %v2183_v3 = vld [vmem:[#allocation2 + $0x68] sm:$0xff]  ;;  %v2185_v4 = vld [vmem:[#allocation2 + $0x60] sm:$0xff] }
  0xd6   : > { %822 = vst.msk [vmem:[#allocation2 + $0x18] sm:$0xff] %vm802_vm1, %v2097_v5  ;;  %820 = vst.msk [vmem:[#allocation2 + $0x8] sm:$0xff] %vm802_vm1, %v2100_v6  ;;  %440 = vperm.xlu1 %1633, %v2100_v6  }
  0xd7   : > { %v396_v11 = vpop.xlane.xlu1 %395  ;;  %v394_v12 = vpop.xlane.xlu0 %393 }
  0xd8   : > { %v2116_v13 = vmax.f32 %v2102_v7, %v396_v11  ;;  %v2119_v14 = vmax.f32 %v2104_v8, %v394_v12  ;;  %v874_v11 = vmul.f32 1.442695, %v857_v50  ;;  %v860_v12 = vsub.f32 %v2010_v26, %v2061_v55 }
  0xda   : > { %824 = vst.msk [vmem:[#allocation2 + $0x28] sm:$0xff] %vm802_vm1, %v2116_v13  ;;  %445 = vperm.xlu1 %1633, %v2078_v61   ;;  %823 = vst.msk [vmem:[#allocation2 + $0x20] sm:$0xff] %vm802_vm1, %v2119_v14  ;;  %1636 = vpow2.f32 %v874_v11  ;;  %v880_v24 = vmul.f32 1.442695, %v860_v12  ;;  %v863_v12 = vsub.f32 %v2003_v23, %v2061_v55 }
  0xdb   : > { %v400_v25 = vpop.xlane.xlu1 %399  ;;  %v398_v28 = vpop.xlane.xlu0 %397 }
  0xdc   : > { %v2135_v31 = vmax.f32 %v2121_v15, %v400_v25  ;;  %v2138_v32 = vmax.f32 %v2123_v16, %v398_v28  ;;  %v858_v28 = vsub.f32 %v1986_v18, %v2061_v55  ;;  %v2209_v25 = vld [vmem:[#allocation2 + $0x70] sm:$0xff] }
  0xdd   : > { %2429 = vst [vmem:[#allocation6_spill] sm:$0xff] %v2209_v25 }
  0xde   : > { %826 = vst.msk [vmem:[#allocation2 + $0x38] sm:$0xff] %vm802_vm1, %v2135_v31  ;;  %450 = vperm.xlu1 %1633, %v2097_v5   ;;  %825 = vst.msk [vmem:[#allocation2 + $0x30] sm:$0xff] %vm802_vm1, %v2138_v32  ;;  %v876_v11 = vmul.f32 1.442695, %v858_v28  ;;  %v882_v28 = vmul.f32 1.442695, %v861_v39 }
  0xdf   : > { %v404_v41 = vpop.xlane.xlu1 %403  ;;  %v402_v43 = vpop.xlane.xlu0 %401 }
  0xe0   : > { %v2154_v45 = vmax.f32 %v2140_v33, %v404_v41  ;;  %v2157_v46 = vmax.f32 %v2142_v37, %v402_v43  ;;  %1638 = vpow2.f32 %v876_v11  ;;  %v886_v11 = vmul.f32 1.442695, %v863_v12 }
  0xe2   : > { %828 = vst.msk [vmem:[#allocation2 + $0x48] sm:$0xff] %vm802_vm1, %v2154_v45  ;;  %480 = vperm.xlu0 %1632, %v2154_v45   ;;  %455 = vperm.xlu1 %1633, %v2119_v14   ;;  %827 = vst.msk [vmem:[#allocation2 + $0x40] sm:$0xff] %vm802_vm1, %v2157_v46 }
  0xe3   : > { %v408_v53 = vpop.xlane.xlu1 %407  ;;  %v406_v54 = vpop.xlane.xlu0 %405 }
  0xe4   : > { %v2178_v59 = vmax.f32 %v2159_v47, %v408_v53  ;;  %v2181_v60 = vmax.f32 %v2161_v48, %v406_v54  ;;  %v859_v53 = vsub.f32 %v1992_v20, %v2061_v55  ;;  %v2207_v54 = vld [vmem:[#allocation2 + $0x78] sm:$0xff] }
  0xe5   : > { %2428 = vst [vmem:[#allocation5_spill] sm:$0xff] %v2207_v54 }
  0xe6   : > { %830 = vst.msk [vmem:[#allocation2 + $0x58] sm:$0xff] %vm802_vm1, %v2178_v59  ;;  %490 = vperm.xlu0 %1632, %v2178_v59   ;;  %460 = vperm.xlu1 %1633, %v2116_v13   ;;  %829 = vst.msk [vmem:[#allocation2 + $0x50] sm:$0xff] %vm802_vm1, %v2181_v60  ;;  %v878_v40 = vmul.f32 1.442695, %v859_v53  ;;  %v1635_v53 = vpop.eup %1634 }
  0xe7   : > { %v412_v41 = vpop.xlane.xlu1 %411  ;;  %v410_v43 = vpop.xlane.xlu0 %409 }
  0xe8   : > { %v2200_v49 = vmax.f32 %v2183_v3, %v412_v41  ;;  %v2203_v50 = vmax.f32 %v2185_v4, %v410_v43  ;;  %v862_v41 = vsub.f32 %v2021_v30, %v2061_v55  ;;  %1640 = vpow2.f32 %v878_v40  ;;  %v1637_v9 = vpop.eup %1636 }
  0xe9   : > { %1642 = vpow2.f32 %v880_v24  ;;  %v1544_v10 = vpack.c.bf16 %v1637_v9, %v1635_v53  ;;  %v866_v40 = vsub.f32 %v2040_v38, %v2061_v55  ;;  %v868_v9 = vsub.f32 %v2046_v42, %v2061_v55 }
  0xea   : > { %832 = vst.msk [vmem:[#allocation2 + $0x68] sm:$0xff] %vm802_vm1, %v2200_v49  ;;  %500 = vperm.xlu0 %1632, %v2200_v49   ;;  %465 = vperm.xlu1 %1633, %v2138_v32   ;;  %831 = vst.msk [vmem:[#allocation2 + $0x60] sm:$0xff] %vm802_vm1, %v2203_v50  ;;  %v884_v17 = vmul.f32 1.442695, %v862_v41  ;;  %1644 = vpow2.f32 %v882_v28  ;;  %v867_v41 = vsub.f32 %v2018_v29, %v2061_v55  ;;  %v1639_v12 = vpop.eup %1638 }
  0xeb   : > { %v416_v43 = vpop.xlane.xlu1 %415  ;;  %v414_v52 = vpop.xlane.xlu0 %413  ;;  %v892_v24 = vmul.f32 1.442695, %v866_v40  ;;  %v896_v53 = vmul.f32 1.442695, %v868_v9 }
  0xec   : > { %v2224_v51 = vmax.f32 %v2207_v54, %v416_v43  ;;  %v2227_v56 = vmax.f32 %v2209_v25, %v414_v52  ;;  %v1824_v43 = vmov 0.0|0.0   ;;  %v865_v52 = vsub.f32 %v2013_v27, %v2061_v55 }
  0xed   : > { %1543 = vmatprep.subr.bf16.mxu1 %v1824_v43  ;;  %1646 = vpow2.f32 %v884_v17  ;;  %v894_v1 = vmul.f32 1.442695, %v867_v41  ;;  %v869_v17 = vsub.f32 %v2033_v35, %v2061_v55 }
  0xee   : > { %2430 = vst [vmem:[#allocation7_spill] sm:$0xff] %v2224_v51  ;;  %834 = vst.msk [vmem:[#allocation2 + $0x78] sm:$0xff] %vm802_vm1, %v2224_v51  ;;  %510 = vperm.xlu0 %1632, %v2224_v51   ;;  %470 = vperm.xlu1 %1633, %v2135_v31   ;;  %v890_v39 = vmul.f32 1.442695, %v865_v52  ;;  %1648 = vpow2.f32 %v886_v11 }
  0xef   : > { %833 = vst.msk [vmem:[#allocation2 + $0x70] sm:$0xff] %vm802_vm1, %v2227_v56  ;;  %1545 = vmatpush3.bf16.msra.mxu1 %v1544_v10  ;;  %1650 = vpow2.f32 %v888_v2  ;;  %v870_v10 = vsub.f32 %v2050_v44, %v2061_v55  ;;  %v898_v11 = vmul.f32 1.442695, %v869_v17 }
  0xf0   : > { %1546 = vmatprep.subr.bf16.mxu1 %v1824_v43  ;;  %1652 = vpow2.f32 %v890_v39  ;;  %v871_v39 = vsub.f32 %v2036_v36, %v2061_v55 }
  0xf1   : > { %1654 = vpow2.f32 %v892_v24  ;;  %v900_v25 = vmul.f32 1.442695, %v870_v10 }
  0xf2   : > { %475 = vperm.xlu1 %1633, %v2157_v46   ;;  %v1641_v52 = vpop.eup %1640  ;;  %1656 = vpow2.f32 %v894_v1  ;;  %v902_v24 = vmul.f32 1.442695, %v871_v39  ;;  %v1827_v39 = vmov 1.0  }
  0xf3   : > { %v1547_v28 = vpack.c.bf16 %v1641_v52, %v1639_v12  ;;  %v1643_v2 = vpop.eup %1642  ;;  %1658 = vpow2.f32 %v896_v53 }
  0xf4   : > { %v1645_v40 = vpop.eup %1644  ;;  %1660 = vpow2.f32 %v898_v11 }
  0xf5   : > { %1548 = vmatpush3.bf16.msra.mxu1 %v1547_v28  ;;  %v1550_v51 = vpack.c.bf16 %v1645_v40, %v1643_v2  ;;  %1662 = vpow2.f32 %v900_v25  ;;  %v1826_v25 = vmov 0.0  }
  0xf6   : > { %485 = vperm.xlu1 %1633, %v2181_v60   ;;  %1549 = vmatprep.subr.bf16.mxu1 %v1824_v43  ;;  %1664 = vpow2.f32 %v902_v24 }
  0xf7   : > { %v1647_v41 = vpop.eup %1646  ;;  %1524 = vmatprep.mubr.msk.f32.mxu1 %vm1825_vm2, %v1826_v25 }
  0xf8   : > { %v1649_v54 = vpop.eup %1648 }
  0xf9   : > { %v1651_v12 = vpop.eup %1650  ;;  %1551 = vmatpush3.bf16.msra.mxu1 %v1550_v51  ;;  %v1553_v1 = vpack.c.bf16 %v1649_v54, %v1647_v41 }
  0xfa   : > { %495 = vperm.xlu1 %1633, %v2203_v50   ;;  %v1653_v9 = vpop.eup %1652  ;;  %1552 = vmatprep.subr.bf16.mxu1 %v1824_v43 }
  0xfb   : > { %v1655_v55 = vpop.eup %1654  ;;  %v1556_v17 = vpack.c.bf16 %v1653_v9, %v1651_v12 }
  0xfc   : > { %v1657_v52 = vpop.eup %1656 }
  0xfd   : > { %1554 = vmatpush3.bf16.msra.mxu1 %v1553_v1  ;;  %v1659_v10 = vpop.eup %1658  ;;  %v1559_v28 = vpack.c.bf16 %v1657_v52, %v1655_v55 }
  0xfe   : > { %505 = vperm.xlu1 %1633, %v2227_v56   ;;  %1555 = vmatprep.subr.bf16.mxu1 %v1824_v43  ;;  %v1661_v53 = vpop.eup %1660 }
  0xff   : > { %v1663_v2 = vpop.eup %1662  ;;  %v1562_v51 = vpack.c.bf16 %v1661_v53, %v1659_v10 }
 0x100   : > { %v1665_v54 = vpop.eup %1664 }
 0x101   : > { %1557 = vmatpush3.bf16.msra.mxu1 %v1556_v17  ;;  %v1565_v11 = vpack.c.bf16 %v1665_v54, %v1663_v2 }
 0x102   : > { %1558 = vmatprep.subr.bf16.mxu1 %v1824_v43 }
 0x105   : > { %1560 = vmatpush3.bf16.msra.mxu1 %v1559_v28 }
 0x106   : > { %1561 = vmatprep.subr.bf16.mxu1 %v1824_v43 }
 0x109   : > { %1563 = vmatpush3.bf16.msra.mxu1 %v1562_v51 }
 0x10a   : > { %1564 = vmatprep.subr.bf16.mxu1 %v1824_v43 }
 0x10d   : > { %1566 = vmatpush3.bf16.msra.mxu1 %v1565_v11 }
 0x110   : > { %1525 = vmatmul.mubr.f32.vlgmr.msra.gmra.mrb[0].mxu1 %v1827_v39 }
 0x151   : > { %v436_v40 = vpop.permute.xlu0 %435 }
 0x152   : > { %v513_v41 = vsub.f32 %v1989_v19, %v436_v40 }
 0x154   : > { %v529_v24 = vmul.f32 1.442695, %v513_v41 }
 0x155   : > { %v441_v12 = vpop.permute.xlu1 %440 }
 0x156   : > { %1666 = vpow2.f32 %v529_v24  ;;  %v514_v1 = vsub.f32 %v1997_v21, %v441_v12 }
 0x158   : > { %v531_v9 = vmul.f32 1.442695, %v514_v1 }
 0x159   : > { %v446_v55 = vpop.permute.xlu1 %445 }
 0x15a   : > { %1668 = vpow2.f32 %v531_v9  ;;  %v515_v17 = vsub.f32 %v1986_v18, %v446_v55 }
 0x15c   : > { %v533_v52 = vmul.f32 1.442695, %v515_v17 }
 0x15d   : > { %v451_v10 = vpop.permute.xlu1 %450 }
 0x15e   : > { %1670 = vpow2.f32 %v533_v52  ;;  %v516_v43 = vsub.f32 %v1992_v20, %v451_v10 }
 0x160   : > { %v1667_v28 = vpop.eup %1666  ;;  %v535_v53 = vmul.f32 1.442695, %v516_v43 }
 0x161   : > { %v456_v2 = vpop.permute.xlu1 %455  ;;  %1468 = vmatprep.mubr.f32.mxu0 %v1667_v28  ;;  %v481_v25 = vpop.permute.xlu0 %480 }
 0x162   : > { %1672 = vpow2.f32 %v535_v53  ;;  %v517_v19 = vsub.f32 %v2010_v26, %v456_v2  ;;  %v522_v9 = vsub.f32 %v2013_v27, %v481_v25 }
 0x164   : > { %v1669_v51 = vpop.eup %1668  ;;  %v537_v54 = vmul.f32 1.442695, %v517_v19  ;;  %v547_v43 = vmul.f32 1.442695, %v522_v9 }
 0x165   : > { %v461_v21 = vpop.permute.xlu1 %460  ;;  %1469 = vmatmul.mubr.f32.vlgmr.msra.gmra.mrb[0].mxu0 %v1669_v51  ;;  %v491_v24 = vpop.permute.xlu0 %490 }
 0x166   : > { %1674 = vpow2.f32 %v537_v54  ;;  %v518_v18 = vsub.f32 %v2000_v22, %v461_v21 }
 0x168   : > { %v1671_v11 = vpop.eup %1670  ;;  %v539_v39 = vmul.f32 1.442695, %v518_v18 }
 0x169   : > { %v466_v40 = vpop.permute.xlu1 %465  ;;  %1471 = vmatprep.mubr.f32.mxu0 %v1671_v11  ;;  %v501_v52 = vpop.permute.xlu0 %500 }
 0x16a   : > { %1676 = vpow2.f32 %v539_v39  ;;  %v519_v20 = vsub.f32 %v2021_v30, %v466_v40  ;;  %v524_v30 = vsub.f32 %v2018_v29, %v491_v24  ;;  %v526_v19 = vsub.f32 %v2033_v35, %v501_v52 }
 0x16b   : > { %v2432_v52 = vsub.f32 %v2075_v58, %v2081_v62  ;;  %v2435_v58 = vsub.f32 %v2102_v7, %v2116_v13  ;;  %v708_v13 = vld [vmem:[#allocation3 + $0x10] sm:$0xff] }
 0x16c   : > { %v1673_v41 = vpop.eup %1672  ;;  %v541_v12 = vmul.f32 1.442695, %v519_v20  ;;  %v551_v27 = vmul.f32 1.442695, %v524_v30  ;;  %v555_v29 = vmul.f32 1.442695, %v526_v19 }
 0x16d   : > { %v471_v1 = vpop.permute.xlu1 %470  ;;  %1472 = vmatmul.mubr.f32.gmra.mrb[2].mxu0 %v1673_v41  ;;  %v511_v54 = vpop.permute.xlu0 %510  ;;  %v748_v62 = vmul.f32 1.442695, %v2435_v58  ;;  %v715_v58 = vld [vmem:[#allocation3 + $0x48] sm:$0xff] }
 0x16e   : > { %1678 = vpow2.f32 %v541_v12  ;;  %v520_v26 = vsub.f32 %v2003_v23, %v471_v1  ;;  %v528_v18 = vsub.f32 %v2036_v36, %v511_v54 }
 0x170   : > { %v1675_v55 = vpop.eup %1674  ;;  %v543_v17 = vmul.f32 1.442695, %v520_v26  ;;  %v559_v35 = vmul.f32 1.442695, %v528_v18 }
 0x171   : > { %v476_v22 = vpop.permute.xlu1 %475  ;;  %1474 = vmatprep.mubr.f32.mxu0 %v1675_v55 }
 0x172   : > { %1680 = vpow2.f32 %v543_v17  ;;  %v521_v10 = vsub.f32 %v2028_v34, %v476_v22  ;;  %v2431_v17 = vsub.f32 %v2085_v0, %v2100_v6  ;;  %v706_v6 = vld [vmem:[#allocation3] sm:$0xff] }
 0x174   : > { %v1677_v28 = vpop.eup %1676  ;;  %v545_v53 = vmul.f32 1.442695, %v521_v10  ;;  %v740_v22 = vmul.f32 1.442695, %v2431_v17  ;;  %v738_v10 = vmul.f32 1.442695, %v2432_v52 }
 0x175   : > { %v486_v2 = vpop.permute.xlu1 %485  ;;  %1475 = vmatmul.mubr.f32.gmra.mrb[4].mxu0 %v1677_v28  ;;  %v2434_v28 = vsub.f32 %v2073_v57, %v2078_v61  ;;  %v712_v52 = vld [vmem:[#allocation3 + $0x30] sm:$0xff] }
 0x176   : > { %1682 = vpow2.f32 %v545_v53  ;;  %v523_v23 = vsub.f32 %v2040_v38, %v486_v2 }
 0x177   : > { %1684 = vpow2.f32 %v547_v43  ;;  %v2433_v43 = vsub.f32 %v2083_v63, %v2097_v5  ;;  %v742_v53 = vmul.f32 1.442695, %v2434_v28 }
 0x178   : > { %v1679_v51 = vpop.eup %1678  ;;  %v549_v21 = vmul.f32 1.442695, %v523_v23  ;;  %v707_v23 = vld [vmem:[#allocation3 + $0x8] sm:$0xff] }
 0x179   : > { %v496_v25 = vpop.permute.xlu1 %495  ;;  %1477 = vmatprep.mubr.f32.mxu0 %v1679_v51  ;;  %v744_v30 = vmul.f32 1.442695, %v2433_v43  ;;  %v2446_v43 = vld [vmem:[#allocation7_spill] sm:$0xff] }
 0x17a   : > { %1686 = vpow2.f32 %v549_v21  ;;  %v525_v34 = vsub.f32 %v2046_v42, %v496_v25  ;;  %v709_v25 = vld [vmem:[#allocation3 + $0x18] sm:$0xff] }
 0x17b   : > { %1688 = vpow2.f32 %v551_v27  ;;  %v2436_v27 = vsub.f32 %v2104_v8, %v2119_v14  ;;  %v2437_v8 = vsub.f32 %v2121_v15, %v2135_v31  ;;  %v2440_v31 = vsub.f32 %v2142_v37, %v2157_v46 }
 0x17c   : > { %v1681_v11 = vpop.eup %1680  ;;  %v553_v39 = vmul.f32 1.442695, %v525_v34  ;;  %v2438_v34 = vsub.f32 %v2123_v16, %v2138_v32  ;;  %v711_v32 = vld [vmem:[#allocation3 + $0x28] sm:$0xff] }
 0x17d   : > { %v506_v40 = vpop.permute.xlu1 %505  ;;  %1478 = vmatmul.mubr.f32.gmra.mrb[6].mxu0 %v1681_v11  ;;  %v746_v19 = vmul.f32 1.442695, %v2436_v27  ;;  %v752_v14 = vmul.f32 1.442695, %v2437_v8  ;;  %v754_v16 = vmul.f32 1.442695, %v2440_v31 }
 0x17e   : > { %1690 = vpow2.f32 %v553_v39  ;;  %v527_v38 = vsub.f32 %v2050_v44, %v506_v40  ;;  %v721_v31 = vld [vmem:[#allocation3 + $0x78] sm:$0xff] }
 0x17f   : > { %1692 = vpow2.f32 %v555_v29  ;;  %v750_v29 = vmul.f32 1.442695, %v2438_v34 }
 0x180   : > { %v1683_v20 = vpop.eup %1682  ;;  %v557_v41 = vmul.f32 1.442695, %v527_v38 }
 0x181   : > { %v1685_v24 = vpop.eup %1684  ;;  %1480 = vmatprep.mubr.f32.mxu0 %v1683_v20  ;;  %v2439_v20 = vsub.f32 %v2140_v33, %v2154_v45  ;;  %v2442_v45 = vsub.f32 %v2161_v48, %v2181_v60  ;;  %v713_v48 = vld [vmem:[#allocation3 + $0x38] sm:$0xff] }
 0x182   : > { %1694 = vpow2.f32 %v557_v41  ;;  %1481 = vmatmul.mubr.f32.gmra.mrb[8].mxu0 %v1685_v24 }
 0x183   : > { %1696 = vpow2.f32 %v559_v35  ;;  %v756_v41 = vmul.f32 1.442695, %v2439_v20 }
 0x184   : > { %v1687_v42 = vpop.eup %1686  ;;  %1698 = vpow2.f32 %v740_v22 }
 0x185   : > { %v1689_v12 = vpop.eup %1688  ;;  %1483 = vmatprep.mubr.f32.mxu0 %v1687_v42  ;;  %1700 = vpow2.f32 %v738_v10  ;;  %v710_v42 = vld [vmem:[#allocation3 + $0x20] sm:$0xff] }
 0x186   : > { %1484 = vmatmul.mubr.f32.gmra.mrb[10].mxu0 %v1689_v12  ;;  %1702 = vpow2.f32 %v744_v30  ;;  %v2441_v12 = vsub.f32 %v2159_v47, %v2178_v59  ;;  %v2444_v59 = vsub.f32 %v2185_v4, %v2203_v50  ;;  %v2445_v10 = vld [vmem:[#allocation5_spill] sm:$0xff] }
 0x187   : > { %1704 = vpow2.f32 %v742_v53  ;;  %v2447_v30 = vsub.f32 %v2445_v10, %v2446_v43  ;;  %v982_v43 = vld [vmem:[#allocation2 + $0x10] sm:$0xff] (!%p1383_p13) }
 0x188   : > { %v1691_v36 = vpop.eup %1690  ;;  %1706 = vpow2.f32 %v748_v62  ;;  %v762_v22 = vmul.f32 1.442695, %v2444_v59 }
 0x189   : > { %v1693_v1 = vpop.eup %1692  ;;  %1486 = vmatprep.mubr.f32.mxu0 %v1691_v36  ;;  %1708 = vpow2.f32 %v746_v19  ;;  %v760_v36 = vmul.f32 1.442695, %v2441_v12  ;;  %v768_v28 = vmul.f32 1.442695, %v2447_v30  ;;  %v714_v19 = vld [vmem:[#allocation3 + $0x40] sm:$0xff] }
 0x18a   : > { %1487 = vmatmul.mubr.f32.gmra.mrb[12].mxu0 %v1693_v1  ;;  %1710 = vpow2.f32 %v752_v14  ;;  %v758_v1 = vmul.f32 1.442695, %v2442_v45 }
 0x18b   : > { %1712 = vpow2.f32 %v750_v29  ;;  %v719_v29 = vld [vmem:[#allocation3 + $0x68] sm:$0xff] }
 0x18c   : > { %v1695_v26 = vpop.eup %1694  ;;  %1714 = vpow2.f32 %v756_v41 }
 0x18d   : > { %v1697_v44 = vpop.eup %1696  ;;  %1489 = vmatprep.mubr.f32.mxu0 %v1695_v26  ;;  %1716 = vpow2.f32 %v754_v16 }
 0x18e   : > { %1490 = vmatmul.mubr.f32.gmra.mrb[14].mxu0 %v1697_v44  ;;  %v1699_v2 = vpop.eup %1698  ;;  %1718 = vpow2.f32 %v760_v36 }
 0x18f   : > { %v1701_v0 = vpop.eup %1700  ;;  %v771_v63 = vmul.f32 %v1699_v2, %v707_v23  ;;  %1720 = vpow2.f32 %v758_v1 }
 0x190   : > { %v770_v51 = vmul.f32 %v1701_v0, %v706_v6  ;;  %v1703_v21 = vpop.eup %1702 }
 0x191   : > { %v1705_v7 = vpop.eup %1704  ;;  %v773_v18 = vmul.f32 %v1703_v21, %v709_v25  ;;  %v716_v25 = vld [vmem:[#allocation3 + $0x50] sm:$0xff] }
 0x192   : > { %v772_v39 = vmul.f32 %v1705_v7, %v708_v13  ;;  %v1707_v15 = vpop.eup %1706 }
 0x193   : > { %v1709_v24 = vpop.eup %1708  ;;  %v775_v33 = vmul.f32 %v1707_v15, %v711_v32 }
 0x194   : > { %v774_v44 = vmul.f32 %v1709_v24, %v710_v42  ;;  %v1711_v47 = vpop.eup %1710  ;;  %v720_v42 = vld [vmem:[#allocation3 + $0x70] sm:$0xff] }
 0x195   : > { %v1713_v60 = vpop.eup %1712 }
 0x196   : > { %v776_v0 = vmul.f32 %v1713_v60, %v712_v52  ;;  %v1715_v4 = vpop.eup %1714 }
 0x197   : > { %v1717_v62 = vpop.eup %1716 }
 0x1e3   : > { %v970_v9 = vpop.f32.mrb[0].mxu1 }
 0x1e4   : > { %975 = vst [vmem:[%s313_s29] sm:$0x1] %v970_v9  ;;  %v1526_v55 = vpop.f32.mrb[1].mxu1 }
 0x1e5   : > { %v2443_v55 = vsub.f32 %v2183_v3, %v2200_v49  ;;  %v777_v3 = vmul.f32 %v1711_v47, %v713_v48  ;;  %v2448_v49 = vld [vmem:[#allocation6_spill] sm:$0xff] }
 0x1e6   : > { %v2449_v53 = vsub.f32 %v2448_v49, %v2227_v56  ;;  %v778_v56 = vmul.f32 %v1717_v62, %v714_v19 }
 0x1e7   : > { %v764_v17 = vmul.f32 1.442695, %v2443_v55 }
 0x1e8   : > { %v766_v2 = vmul.f32 1.442695, %v2449_v53 }
 0x1e9   : > { %1722 = vpow2.f32 %v764_v17 }
 0x1ea   : > { %1724 = vpow2.f32 %v762_v22 }
 0x1eb   : > { %1726 = vpow2.f32 %v768_v28 }
 0x1ec   : > { %1728 = vpow2.f32 %v766_v2 }
 0x238   : > { %v1470_v5 = vpop.f32.mrb[0].mxu0 }
 0x239   : > { %v787_v54 = vadd.f32 %v1470_v5, %v771_v63  ;;  %v627_v57 = vpop.f32.mrb[1].mxu0  ;;  %v779_v63 = vmul.f32 %v1715_v4, %v715_v58  ;;  %v1719_v5 = vpop.eup %1718  ;;  %v981_v58 = vld [vmem:[#allocation2 + $0x8] sm:$0xff] (!%p1383_p13) }
 0x23a   : > { %v786_v61 = vadd.f32 %v770_v51, %v627_v57  ;;  %v1721_v57 = vpop.eup %1720 }
 0x23b   : > { %804 = vst.msk [vmem:[#allocation3 + $0x8] sm:$0xff] %vm802_vm1, %v787_v54  ;;  %v717_v54 = vld [vmem:[#allocation3 + $0x58] sm:$0xff]  ;;  %v1723_v8 = vpop.eup %1722  ;;  %v780_v34 = vmul.f32 %v1721_v57, %v716_v25 }
 0x23c   : > { %803 = vst.msk [vmem:[#allocation3] sm:$0xff] %vm802_vm1, %v786_v61  ;;  %v781_v13 = vmul.f32 %v1719_v5, %v717_v54 }
 0x240   : > { %v1473_v11 = vpop.f32.mrb[2].mxu0 }
 0x241   : > { %v789_v40 = vadd.f32 %v1473_v11, %v773_v18  ;;  %v637_v38 = vpop.f32.mrb[3].mxu0  ;;  %v1725_v18 = vpop.eup %1724 }
 0x242   : > { %v788_v35 = vadd.f32 %v772_v39, %v637_v38  ;;  %v1727_v20 = vpop.eup %1726  ;;  %v997_v17 = vld [vmem:[#allocation3 + $0x8] sm:$0xff] (!%p1383_p13) }
 0x243   : > { %806 = vst.msk [vmem:[#allocation3 + $0x18] sm:$0xff] %vm802_vm1, %v789_v40  ;;  %v718_v40 = vld [vmem:[#allocation3 + $0x60] sm:$0xff]  ;;  %v1729_v16 = vpop.eup %1728  ;;  %v785_v36 = vmul.f32 %v1727_v20, %v721_v31 }
 0x244   : > { %805 = vst.msk [vmem:[#allocation3 + $0x10] sm:$0xff] %vm802_vm1, %v788_v35  ;;  %v783_v35 = vmul.f32 %v1723_v8, %v719_v29  ;;  %v782_v15 = vmul.f32 %v1725_v18, %v718_v40  ;;  %v784_v45 = vmul.f32 %v1729_v16, %v720_v42  ;;  %v989_v16 = vld [vmem:[#allocation2 + $0x48] sm:$0xff] (!%p1383_p13)  ;;  %v988_v42 = vld [vmem:[#allocation2 + $0x40] sm:$0xff] (!%p1383_p13) }
 0x248   : > { %v1476_v26 = vpop.f32.mrb[4].mxu0 }
 0x249   : > { %v791_v37 = vadd.f32 %v1476_v26, %v775_v33  ;;  %v647_v46 = vpop.f32.mrb[5].mxu0 }
 0x24a   : > { %v790_v9 = vadd.f32 %v774_v44, %v647_v46  ;;  %v1828_v46 = vmov (!%p1383_p13), 0   ;;  %v999_v55 = vld [vmem:[#allocation3 + $0x18] sm:$0xff] (!%p1383_p13) }
 0x24b   : > { %808 = vst.msk [vmem:[#allocation3 + $0x28] sm:$0xff] %vm802_vm1, %v791_v37  ;;  %v998_v37 = vld [vmem:[#allocation3 + $0x10] sm:$0xff] (!%p1383_p13)  ;;  %1731 = vset.pattern.permute.xlu1 (!%p1383_p13), %v1828_v46  ;;  %1730 = vset.pattern.permute.xlu0 (!%p1383_p13), %v1828_v46 }
 0x24c   : > { %807 = vst.msk [vmem:[#allocation3 + $0x20] sm:$0xff] %vm802_vm1, %v790_v9  ;;  %1732 = vlog2.f32 (!%p1383_p13), %v998_v37  ;;  %v996_v9 = vld [vmem:[#allocation3] sm:$0xff] (!%p1383_p13)  ;;  %v990_v37 = vld [vmem:[#allocation2 + $0x50] sm:$0xff] (!%p1383_p13) }
 0x24d   : > { %1734 = vlog2.f32 (!%p1383_p13), %v996_v9 }
 0x24e   : > { %1736 = vlog2.f32 (!%p1383_p13), %v999_v55 }
 0x24f   : > { %1738 = vlog2.f32 (!%p1383_p13), %v997_v17 }
 0x250   : > { %v1479_v23 = vpop.f32.mrb[6].mxu0 }
 0x251   : > { %v793_v50 = vadd.f32 %v1479_v23, %v777_v3  ;;  %v657_v6 = vpop.f32.mrb[7].mxu0  ;;  %v980_v3 = vld [vmem:[#allocation2] sm:$0xff] (!%p1383_p13)  ;;  %v983_v23 = vld [vmem:[#allocation2 + $0x18] sm:$0xff] (!%p1383_p13) }
 0x252   : > { %v792_v27 = vadd.f32 %v776_v0, %v657_v6  ;;  %v1001_v47 = vld [vmem:[#allocation3 + $0x28] sm:$0xff] (!%p1383_p13) }
 0x253   : > { %810 = vst.msk [vmem:[#allocation3 + $0x38] sm:$0xff] %vm802_vm1, %v793_v50  ;;  %v1000_v59 = vld [vmem:[#allocation3 + $0x20] sm:$0xff] (!%p1383_p13)  ;;  %1740 = vlog2.f32 (!%p1383_p13), %v1001_v47  ;;  %v993_v47 = vld [vmem:[#allocation2 + $0x68] sm:$0xff] (!%p1383_p13) }
 0x254   : > { %809 = vst.msk [vmem:[#allocation3 + $0x30] sm:$0xff] %vm802_vm1, %v792_v27  ;;  %1742 = vlog2.f32 (!%p1383_p13), %v1000_v59 }
 0x255   : > { %v1482_v51 = vpop.f32.mrb[8].mxu0 }
 0x256   : > { %v795_v61 = vadd.f32 %v1482_v51, %v779_v63  ;;  %v667_v21 = vpop.f32.mrb[9].mxu0  ;;  %v1733_v10 = vpop.eup (!%p1383_p13), %1732 }
 0x257   : > { %v794_v7 = vadd.f32 %v778_v56, %v667_v21  ;;  %v1735_v30 = vpop.eup (!%p1383_p13), %1734  ;;  %v1017_v28 = vmul.f32 (!%p1383_p13), 0.6931472, %v1733_v10 }
 0x258   : > { %812 = vst.msk [vmem:[#allocation3 + $0x48] sm:$0xff] %vm802_vm1, %v795_v61  ;;  %v1737_v53 = vpop.eup (!%p1383_p13), %1736  ;;  %v1013_v2 = vmul.f32 (!%p1383_p13), 0.6931472, %v1735_v30  ;;  %v985_v61 = vld [vmem:[#allocation2 + $0x28] sm:$0xff] (!%p1383_p13) }
 0x259   : > { %811 = vst.msk [vmem:[#allocation3 + $0x40] sm:$0xff] %vm802_vm1, %v794_v7  ;;  %v1485_v14 = vpop.f32.mrb[10].mxu0  ;;  %v1739_v4 = vpop.eup (!%p1383_p13), %1738  ;;  %v1046_v50 = vadd.f32 (!%p1383_p13), %v1017_v28, %v982_v43  ;;  %v1019_v6 = vmul.f32 (!%p1383_p13), 0.6931472, %v1737_v53  ;;  %v995_v43 = vld [vmem:[#allocation2 + $0x78] sm:$0xff] (!%p1383_p13)  ;;  %v994_v28 = vld [vmem:[#allocation2 + $0x70] sm:$0xff] (!%p1383_p13)  ;;  %v1124_v53 = vlaneseq (!%p1383_p13) }
 0x25a   : > { %v797_v11 = vadd.f32 %v1485_v14, %v781_v13  ;;  %v677_v39 = vpop.f32.mrb[11].mxu0  ;;  %v1003_v22 = vld [vmem:[#allocation3 + $0x38] sm:$0xff] (!%p1383_p13)  ;;  %v1044_v27 = vadd.f32 (!%p1383_p13), %v1013_v2, %v980_v3  ;;  %v1015_v19 = vmul.f32 (!%p1383_p13), 0.6931472, %v1739_v4  ;;  %v984_v13 = vld [vmem:[#allocation2 + $0x20] sm:$0xff] (!%p1383_p13) }
 0x25b   : > { %v796_v38 = vadd.f32 %v780_v34, %v677_v39  ;;  %v1002_v48 = vld [vmem:[#allocation3 + $0x30] sm:$0xff] (!%p1383_p13)  ;;  %1744 = vlog2.f32 (!%p1383_p13), %v1003_v22  ;;  %1083 = vperm.xlu1 (!%p1383_p13), %1731, %v1046_v50   ;;  %v1047_v5 = vadd.f32 (!%p1383_p13), %v1019_v6, %v983_v23  ;;  %v2359_v2 = vand.u32 (!%p1383_p13), 127, %v1124_v53 }
 0x25c   : > { %814 = vst.msk [vmem:[#allocation3 + $0x58] sm:$0xff] %vm802_vm1, %v797_v11  ;;  %1746 = vlog2.f32 (!%p1383_p13), %v1002_v48  ;;  %1077 = vperm.xlu0 (!%p1383_p13), %1730, %v1044_v27   ;;  %v1045_v57 = vadd.f32 (!%p1383_p13), %v1015_v19, %v981_v58  ;;  %v987_v11 = vld [vmem:[#allocation2 + $0x38] sm:$0xff] (!%p1383_p13)  ;;  %v992_v48 = vld [vmem:[#allocation2 + $0x60] sm:$0xff] (!%p1383_p13)  ;;  %v2361_v23 = vshrl.u32 (!%p1383_p13), %v1124_v53, 7 }
 0x25d   : > { %813 = vst.msk [vmem:[#allocation3 + $0x50] sm:$0xff] %vm802_vm1, %v796_v38  ;;  %v1488_v41 = vpop.f32.mrb[12].mxu0  ;;  %v1741_v62 = vpop.eup (!%p1383_p13), %1740  ;;  %v1137_v4 = vadd.s32 (!%p1383_p13), 4294967280, %v2359_v2  ;;  %v1144_v6 = vadd.s32 (!%p1383_p13), 4294967272, %v2359_v2  ;;  %v1151_v19 = vadd.s32 (!%p1383_p13), 4294967264, %v2359_v2 }
 0x25e   : > { %v799_v32 = vadd.f32 %v1488_v41, %v783_v35  ;;  %v687_v24 = vpop.f32.mrb[13].mxu0  ;;  %v1743_v63 = vpop.eup (!%p1383_p13), %1742  ;;  %v1023_v51 = vmul.f32 (!%p1383_p13), 0.6931472, %v1741_v62  ;;  %v986_v35 = vld [vmem:[#allocation2 + $0x30] sm:$0xff] (!%p1383_p13)  ;;  %v1128_v62 = vsub.s32 (!%p1383_p13), %v2359_v2, %v2361_v23 }
 0x25f   : > { %v798_v12 = vadd.f32 %v782_v15, %v687_v24  ;;  %979 = sbr.rel (%p1383_p13) target bundleno = 769 (0x301), region = 70  ;;  %v1005_v60 = vld [vmem:[#allocation3 + $0x48] sm:$0xff] (!%p1383_p13)  ;;  %v1021_v21 = vmul.f32 (!%p1383_p13), 0.6931472, %v1743_v63  ;;  %1086 = vperm.xlu1 (!%p1383_p13), %1731, %v1047_v5   ;;  %v1140_v63 = vsub.s32 (!%p1383_p13), %v1137_v4, %v2361_v23  ;;  %v1158_v5 = vadd.s32 (!%p1383_p13), 4294967256, %v2359_v2 }
 0x260   : > { %816 = vst.msk [vmem:[#allocation3 + $0x68] sm:$0xff] %vm802_vm1, %v799_v32  ;;  %v1004_v52 = vld [vmem:[#allocation3 + $0x40] sm:$0xff] (!%p1383_p13)  ;;  %1748 = vlog2.f32 (!%p1383_p13), %v1005_v60  ;;  %v1049_v8 = vadd.f32 (!%p1383_p13), %v1023_v51, %v985_v61  ;;  %1080 = vperm.xlu0 (!%p1383_p13), %1730, %v1045_v57   ;;  %v1147_v51 = vsub.s32 (!%p1383_p13), %v1144_v6, %v2361_v23 }
 0x261   : > { %815 = vst.msk [vmem:[#allocation3 + $0x60] sm:$0xff] %vm802_vm1, %v798_v12  ;;  %v1491_v33 = vpop.f32.mrb[14].mxu0  ;;  %1750 = vlog2.f32 (!%p1383_p13), %v1004_v52  ;;  %v1048_v18 = vadd.f32 (!%p1383_p13), %v1021_v21, %v984_v13  ;;  %v1154_v21 = vsub.s32 (!%p1383_p13), %v1151_v19, %v2361_v23  ;;  %v1161_v13 = vsub.s32 (!%p1383_p13), %v1158_v5, %v2361_v23 }
 0x262   : > { %v801_v1 = vadd.f32 %v1491_v33, %v785_v36  ;;  %v697_v26 = vpop.f32.mrb[15].mxu0 }
 0x263   : > { %v800_v44 = vadd.f32 %v784_v45, %v697_v26  ;;  %v1007_v49 = vld [vmem:[#allocation3 + $0x58] sm:$0xff] (!%p1383_p13)  ;;  %1092 = vperm.xlu1 (!%p1383_p13), %1731, %v1049_v8   ;;  %v1172_v8 = vadd.s32 (!%p1383_p13), 4294967240, %v2359_v2 }
 0x264   : > { %818 = vst.msk [vmem:[#allocation3 + $0x78] sm:$0xff] %vm802_vm1, %v801_v1  ;;  %v1006_v0 = vld [vmem:[#allocation3 + $0x50] sm:$0xff] (!%p1383_p13)  ;;  %1752 = vlog2.f32 (!%p1383_p13), %v1007_v49  ;;  %1089 = vperm.xlu0 (!%p1383_p13), %1730, %v1048_v18   ;;  %v991_v1 = vld [vmem:[#allocation2 + $0x58] sm:$0xff] (!%p1383_p13) }
 0x265   : > { %817 = vst.msk [vmem:[#allocation3 + $0x70] sm:$0xff] %vm802_vm1, %v800_v44  ;;  %1754 = vlog2.f32 (!%p1383_p13), %v1006_v0  ;;  %v1745_v54 = vpop.eup (!%p1383_p13), %1744  ;;  %v1130_v0 = vadd.s32 (!%p1383_p13), 4294967288, %v2359_v2  ;;  %vm1233_vm1 = vcmask (!%p1383_p13), 1048512  }
 0x266   : > { %v1747_v7 = vpop.eup %1746  ;;  %v1027_v14 = vmul.f32 0.6931472, %v1745_v54 }
 0x267   : > { %v1009_v56 = vld [vmem:[#allocation3 + $0x68] sm:$0xff]  ;;  %v1025_v39 = vmul.f32 0.6931472, %v1747_v7  ;;  %v1133_v27 = vsub.s32 %v1130_v0, %v2361_v23 }
 0x268   : > { %v1008_v25 = vld [vmem:[#allocation3 + $0x60] sm:$0xff]  ;;  %1756 = vlog2.f32 %v1009_v56  ;;  %v1051_v20 = vadd.f32 %v1027_v14, %v987_v11 }
 0x269   : > { %1758 = vlog2.f32 %v1008_v25  ;;  %v1050_v31 = vadd.f32 %v1025_v39, %v986_v35  ;;  %v1165_v25 = vadd.s32 4294967248, %v2359_v2  ;;  %v1179_v35 = vadd.s32 4294967232, %v2359_v2 }
 0x26a   : > { %v1749_v29 = vpop.eup %1748  ;;  %1098 = vperm.xlu1 %1731, %v1051_v20  }
 0x26b   : > { %v1011_v34 = vld [vmem:[#allocation3 + $0x78] sm:$0xff]  ;;  %v1751_v38 = vpop.eup %1750  ;;  %v1031_v41 = vmul.f32 0.6931472, %v1749_v29  ;;  %1095 = vperm.xlu0 %1730, %v1050_v31  }
 0x26c   : > { %v1010_v40 = vld [vmem:[#allocation3 + $0x70] sm:$0xff]  ;;  %1760 = vlog2.f32 %v1011_v34  ;;  %v1029_v32 = vmul.f32 0.6931472, %v1751_v38  ;;  %v1168_v38 = vsub.s32 %v1165_v25, %v2361_v23 }
 0x26d   : > { %1762 = vlog2.f32 %v1010_v40  ;;  %v1053_v12 = vadd.f32 %v1031_v41, %v989_v16  ;;  %v1175_v41 = vsub.s32 %v1172_v8, %v2361_v23 }
 0x26e   : > { %v1753_v15 = vpop.eup %1752  ;;  %v1052_v45 = vadd.f32 %v1029_v32, %v988_v42  ;;  %v1182_v42 = vsub.s32 %v1179_v35, %v2361_v23 }
 0x26f   : > { %v1755_v24 = vpop.eup %1754  ;;  %v1035_v36 = vmul.f32 0.6931472, %v1753_v15  ;;  %1104 = vperm.xlu1 %1731, %v1053_v12   ;;  %v1186_v15 = vadd.s32 4294967224, %v2359_v2  ;;  %v1193_v12 = vadd.s32 4294967216, %v2359_v2 }
 0x270   : > { %v1033_v26 = vmul.f32 0.6931472, %v1755_v24  ;;  %1101 = vperm.xlu0 %1730, %v1052_v45  }
 0x271   : > { %v1055_v46 = vadd.f32 %v1035_v36, %v991_v1  ;;  %v1189_v45 = vsub.s32 %v1186_v15, %v2361_v23  ;;  %v1200_v1 = vadd.s32 4294967208, %v2359_v2 }
 0x272   : > { %v1757_v33 = vpop.eup %1756  ;;  %v1054_v17 = vadd.f32 %v1033_v26, %v990_v37 }
 0x273   : > { %v1759_v44 = vpop.eup %1758  ;;  %v1039_v9 = vmul.f32 0.6931472, %v1757_v33  ;;  %1110 = vperm.xlu1 %1731, %v1055_v46  }
 0x274   : > { %v1037_v59 = vmul.f32 0.6931472, %v1759_v44  ;;  %1107 = vperm.xlu0 %1730, %v1054_v17  }
 0x275   : > { %v1057_v60 = vadd.f32 %v1039_v9, %v993_v47  ;;  %v1196_v9 = vsub.s32 %v1193_v12, %v2361_v23 }
 0x276   : > { %v1761_v55 = vpop.eup %1760  ;;  %v1056_v10 = vadd.f32 %v1037_v59, %v992_v48  ;;  %v1203_v59 = vsub.s32 %v1200_v1, %v2361_v23 }
 0x277   : > { %v1763_v22 = vpop.eup %1762  ;;  %v1043_v52 = vmul.f32 0.6931472, %v1761_v55  ;;  %1116 = vperm.xlu1 %1731, %v1057_v60   ;;  %v1207_v55 = vadd.s32 4294967200, %v2359_v2 }
 0x278   : > { %v1041_v30 = vmul.f32 0.6931472, %v1763_v22  ;;  %1113 = vperm.xlu0 %1730, %v1056_v10   ;;  %v1214_v22 = vadd.s32 4294967192, %v2359_v2  ;;  %v1228_v10 = vadd.s32 4294967176, %v2359_v2 }
 0x279   : > { %v1059_v3 = vadd.f32 %v1043_v52, %v995_v43 }
 0x27a   : > { %v1058_v49 = vadd.f32 %v1041_v30, %v994_v28  ;;  %v1210_v30 = vsub.s32 %v1207_v55, %v2361_v23  ;;  %v1221_v28 = vadd.s32 4294967184, %v2359_v2  ;;  %v1217_v53 = vsub.s32 %v1214_v22, %v2361_v23 }
 0x27b   : > { %1122 = vperm.xlu1 %1731, %v1059_v3   ;;  %v1231_v6 = vsub.s32 %v1228_v10, %v2361_v23 }
 0x27c   : > { %1119 = vperm.xlu0 %1730, %v1058_v49  }
 0x2da   : > { %v1084_v50 = vpop.permute.xlu1 %1083 }
 0x2db   : > { %v1078_v58 = vpop.permute.xlu0 %1077  ;;  %v1141_v7 = vrot.slane %v1084_v50, %v1140_v63 }
 0x2dc   : > { %v1129_v57 = vrot.slane %v1078_v58, %v1128_v62  ;;  %v1224_v62 = vsub.s32 %v1221_v28, %v2361_v23 }
 0x2de   : > { %v1087_v56 = vpop.permute.xlu1 %1086 }
 0x2df   : > { %v1081_v54 = vpop.permute.xlu0 %1080  ;;  %v1148_v14 = vrot.slane %v1087_v56, %v1147_v51 }
 0x2e0   : > { %v1134_v61 = vrot.slane %v1081_v54, %v1133_v27 }
 0x2e2   : > { %v1136_v34 = vsel %vm1135_vm3, %v1134_v61, %v1129_v57  ;;  %v1093_v29 = vpop.permute.xlu1 %1092 }
 0x2e3   : > { %v1143_v18 = vsel %vm1142_vm4, %v1141_v7, %v1136_v34  ;;  %v1090_v11 = vpop.permute.xlu0 %1089  ;;  %v1162_v20 = vrot.slane %v1093_v29, %v1161_v13 }
 0x2e4   : > { %v1150_v39 = vsel %vm1149_vm5, %v1148_v14, %v1143_v18  ;;  %v1155_v40 = vrot.slane %v1090_v11, %v1154_v21 }
 0x2e6   : > { %v1157_v31 = vsel %vm1156_vm6, %v1155_v40, %v1150_v39 }
 0x2e7   : > { %v1164_v33 = vsel %vm1163_vm7, %v1162_v20, %v1157_v31 }
 0x2e9   : > { %v1099_v16 = vpop.permute.xlu1 %1098 }
 0x2ea   : > { %v1096_v32 = vpop.permute.xlu0 %1095  ;;  %v1176_v36 = vrot.slane %v1099_v16, %v1175_v41 }
 0x2eb   : > { %v1169_v24 = vrot.slane %v1096_v32, %v1168_v38 }
 0x2ed   : > { %v1171_v26 = vsel %vm1170_vm8, %v1169_v24, %v1164_v33 }
 0x2ee   : > { %v1105_v44 = vpop.permute.xlu1 %1104  ;;  %v1178_v47 = vsel %vm1177_vm9, %v1176_v36, %v1171_v26 }
 0x2ef   : > { %v1102_v37 = vpop.permute.xlu0 %1101  ;;  %v1190_v17 = vrot.slane %v1105_v44, %v1189_v45 }
 0x2f0   : > { %v1183_v46 = vrot.slane %v1102_v37, %v1182_v42 }
 0x2f2   : > { %v1185_v48 = vsel %vm1184_vm10, %v1183_v46, %v1178_v47  ;;  %v1111_v60 = vpop.permute.xlu1 %1110 }
 0x2f3   : > { %v1108_v52 = vpop.permute.xlu0 %1107  ;;  %v1204_v3 = vrot.slane %v1111_v60, %v1203_v59  ;;  %v1192_v49 = vsel %vm1191_vm11, %v1190_v17, %v1185_v48 }
 0x2f4   : > { %v1197_v43 = vrot.slane %v1108_v52, %v1196_v9 }
 0x2f6   : > { %v1199_v0 = vsel %vm1198_vm12, %v1197_v43, %v1192_v49  ;;  %v1117_v4 = vpop.permute.xlu1 %1116 }
 0x2f7   : > { %v1114_v50 = vpop.permute.xlu0 %1113  ;;  %v1218_v27 = vrot.slane %v1117_v4, %v1217_v53  ;;  %v1206_v19 = vsel %vm1205_vm13, %v1204_v3, %v1199_v0 }
 0x2f8   : > { %v1211_v58 = vrot.slane %v1114_v50, %v1210_v30 }
 0x2fa   : > { %v1213_v63 = vsel %vm1212_vm14, %v1211_v58, %v1206_v19  ;;  %v1123_v5 = vpop.permute.xlu1 %1122 }
 0x2fb   : > { %v1232_v2 = vrot.slane %v1123_v5, %v1231_v6  ;;  %v1120_v51 = vpop.permute.xlu0 %1119  ;;  %v1220_v54 = vsel %vm1219_vm15, %v1218_v27, %v1213_v63 }
 0x2fc   : > { %v1225_v56 = vrot.slane %v1120_v51, %v1224_v62 }
 0x2fe   : > { %v1227_v57 = vsel %vm1226_vm0, %v1225_v56, %v1220_v54 }
 0x2ff   : > { %v1234_v61 = vsel %vm1233_vm1, %v1232_v2, %v1227_v57 }
 0x300   : > { %1236 = vst [vmem:[%s301_s23] sm:$0x1] %v1234_v61 }
 0x301 PF: > { %s14_s18 = sadd.s32 1, %s1818_s18   ;;  %s2450_s12 = smov %s1798_s13 }
 0x302   : > { %p11_p0 = scmp.ge.s32.totalorder %s14_s18, 6   ;;  %s2451_s13 = smov %s1900_s25 }
 0x303   : > { %s2452_s14 = smov %s1810_s16  ;;  %s2453_s15 = smov %s1814_s17 }
 0x304   : > { %s2454_s16 = smov %s2457_s19  ;;  %s2455_s17 = smov %s2461_s20 }
 0x305   :  { %13 = sbr.rel (!%p11_p0) target bundleno = 4 (0x4), region = 129 }

</bundles_post_ra>
